<compile_context>
chip_gen: v5e
topology: v5e:2x2
jax: 0.10.0
libtpu: 0.0.40
codegen_flags: <defaults>
</compile_context>

<pallas_src>
import math

import jax
import jax.numpy as jnp
from jax.experimental import pallas as pl
from jax.experimental.pallas import tpu as pltpu

# ---- problem sizes (small, consistent with the module defaults) ----
B = 2            # batch_size
S = 2            # stock_num
L = 8            # max_length
F = 4            # feature_num (ohlc)
T = 4            # len(target_time)
IWAE = 1         # iwae_num (module default)
K = 16           # sample_iwae_num (kept small for the test)
Bp = B * IWAE

_LOG_2PI = math.log(2.0 * math.pi)


# --------------------------------------------------------------------------
# Fused kernel: observe_to_base + calculate_likelihood + sde_extrapolation
# --------------------------------------------------------------------------
def strader_fused_kernel(x_ref, t_ref, mask_ref, oh_ref, tgt_ref,
                         mu_ref, sigma_ref, eps_ref,
                         ll_ref, xex_ref):
    x = x_ref[...][0]            # (Bp, L, F)
    tt = t_ref[...][0]           # (Bp, L)
    msk = mask_ref[...][0]       # (Bp, L)
    oh = oh_ref[...][0]          # (Bp, L)   one-hot of final_index
    tgt = tgt_ref[...]           # (1, T)
    mu = mu_ref[...][0]          # (1, F)
    sigma = sigma_ref[...][0]    # (1, F)
    eps = eps_ref[...][0]        # (Bp, T, F, K)

    # ---- observe_to_base: stable inverse-softplus + its log-Jacobian -------
    # z = softplus^-1(x) = x + log(1 - exp(-x)); the log term is shared with
    # the transform logdet (overflow-safe, unlike log(exp(x) - 1)).
    en = jnp.exp(-x)
    log1m = jnp.log(1.0 - en)                                # (Bp, L, F)
    z = x + log1m
    transform_logdet = jnp.sum(log1m, axis=-1)               # (Bp, L)

    # spf (CTFP flow) is identity here -> z passes through, flow logdet == 0.
    logz = jnp.log(z)            # used by both the density and the gather

    # ---- GBM transition log-density over consecutive observations ----------
    logz_prev = logz[:, :-1, :]
    logz_cur = logz[:, 1:, :]
    t_prev = tt[:, :-1]
    t_cur = tt[:, 1:]
    dt = t_cur - t_prev                                      # (Bp, L-1)

    drift = mu - 0.5 * sigma * sigma                         # (1, F)
    log_sigma = jnp.log(sigma)                               # (1, F), hoisted
    sqrt_dt = jnp.maximum(jnp.sqrt(dt), 2e-5)                # (Bp, L-1)

    mean = logz_prev + drift[None] * dt[:, :, None]          # (Bp, L-1, F)
    std = sigma[None] * sqrt_dt[:, :, None]
    inv_std = pl.reciprocal(std, approx=True)
    log_std = log_sigma[None] + jnp.log(sqrt_dt)[:, :, None]
    logprob = (-0.5 * ((logz_cur - mean) * inv_std) ** 2
               - log_std - 0.5 * _LOG_2PI)

    obs = (t_cur != 0.0).astype(jnp.float32)                 # (Bp, L-1)
    ll_feat = jnp.sum(logprob * obs[:, :, None], axis=-1)    # (Bp, L-1)

    # calculate_likelihood: (ll - flow_logdet(=0) - transform_logdet) * mask,
    # averaged over all L-1 positions (matches torch's ll.mean(1)).
    ll_row = (ll_feat - transform_logdet[:, 1:]) * msk[:, 1:]
    ll_vec = jnp.mean(ll_row, axis=1)                        # (Bp,)
    ll_ref[...] = ll_vec[None, None, :]                      # (1, 1, Bp)

    # ---- sde_extrapolation: in-kernel gather at final_index ----------------
    logz_pre = jnp.sum(logz * oh[:, :, None], axis=1, keepdims=True)  # (Bp,1,F)
    t_pre = jnp.sum(tt * oh, axis=1, keepdims=True)                   # (Bp,1)
    dt_e = tgt - t_pre                                                # (Bp,T)
    sqrt_dt_e = jnp.maximum(jnp.sqrt(dt_e), 2e-5)

    # sample_from_base_process (torch uses mu here, not mu - 0.5*sigma^2):
    #   mean_K exp(mean_e + std_e*eps_k) == exp(mean_e) * mean_K exp(std_e*eps_k)
    mean_e = logz_pre + mu[None] * dt_e[:, :, None]                   # (Bp,T,F)
    std_e = sigma[None] * sqrt_dt_e[:, :, None]                       # (Bp,T,F)
    factor = jnp.mean(jnp.exp(std_e[..., None] * eps), axis=-1)       # (Bp,T,F)
    xex_ref[...] = (jnp.exp(mean_e) * factor)[None]                   # (1,Bp,T,F)


def strader_fused(x_s, t_s, m_s, oh_s, tgt, mu, sigma, eps):
    return pl.pallas_call(
        strader_fused_kernel,
        out_shape=(jax.ShapeDtypeStruct((S, 1, Bp), jnp.float32),
                   jax.ShapeDtypeStruct((S, Bp, T, F), jnp.float32)),
        grid=(S,),
        in_specs=[
            pl.BlockSpec((1, Bp, L, F), lambda s: (s, 0, 0, 0)),
            pl.BlockSpec((1, Bp, L), lambda s: (s, 0, 0)),
            pl.BlockSpec((1, Bp, L), lambda s: (s, 0, 0)),
            pl.BlockSpec((1, Bp, L), lambda s: (s, 0, 0)),
            pl.BlockSpec((1, T), lambda s: (0, 0)),
            pl.BlockSpec((1, 1, F), lambda s: (s, 0, 0)),
            pl.BlockSpec((1, 1, F), lambda s: (s, 0, 0)),
            pl.BlockSpec((1, Bp, T, F, K), lambda s: (s, 0, 0, 0, 0)),
        ],
        out_specs=(
            pl.BlockSpec((1, 1, Bp), lambda s: (s, 0, 0)),
            pl.BlockSpec((1, Bp, T, F), lambda s: (s, 0, 0, 0)),
        ),
        compiler_params=pltpu.CompilerParams(
            dimension_semantics=("parallel",)),
    )(x_s, t_s, m_s, oh_s, tgt, mu, sigma, eps)


# --------------------------------------------------------------------------
# Parameters (deterministic, as in __init__): mu = 0, pre_softplus_sigma = 0.02
# --------------------------------------------------------------------------
def make_params(stock_num, feat):
    mu = jnp.zeros((stock_num, 1, feat), jnp.float32)
    pre_softplus_sigma = jnp.full((stock_num, 1, feat), 0.02, jnp.float32)
    # sigma = max(relu(pre_softplus_sigma), 1e-5), as in density_calculation
    sigma = jnp.maximum(jnp.maximum(pre_softplus_sigma, 0.0), 1e-5)
    return mu, sigma


# --------------------------------------------------------------------------
# STraderStateModel.forward (thin glue around the single fused kernel)
# --------------------------------------------------------------------------
def strader_forward(x, t, mask, final_index, target_time, mu, sigma, noise_key):
    # x: (B, S, L, F), t: (B, S, L, 1), mask: (B, S, L), final_index: (B, S)
    # repeat_interleave(iwae_num, 0)
    x_r = jnp.repeat(x, IWAE, axis=0)
    t_r = jnp.repeat(t, IWAE, axis=0)
    m_r = jnp.repeat(mask, IWAE, axis=0)
    oh = jax.nn.one_hot(final_index, L, dtype=jnp.float32)   # (B, S, L)
    oh_r = jnp.repeat(oh, IWAE, axis=0)

    # stock-major layouts for the kernel
    x_s = jnp.transpose(x_r, (1, 0, 2, 3))                   # (S, Bp, L, F)
    t_s = jnp.transpose(t_r[..., 0], (1, 0, 2))              # (S, Bp, L)
    m_s = jnp.transpose(m_r, (1, 0, 2))                      # (S, Bp, L)
    oh_s = jnp.transpose(oh_r, (1, 0, 2))                    # (S, Bp, L)
    tgt = target_time[None, :]                               # (1, T)

    # Precomputed normal noise, K on the trailing (lane) axis.
    eps = jax.random.normal(noise_key, (S, Bp, T, F, K), dtype=jnp.float32)

    ll_s, z_extra = strader_fused(x_s, t_s, m_s, oh_s, tgt, mu, sigma, eps)

    # calculate_likelihood tail: softmax over iwae dim, weighted sum, sum stocks
    ll = ll_s[:, 0, :].reshape(S, B, IWAE)
    w = jax.nn.softmax(jax.lax.stop_gradient(ll), axis=-1)
    likelihood = jnp.sum(jnp.sum(w * ll, axis=-1), axis=0)   # (B,)

    # base_to_observe with identity flow == mean over iwae of the extrapolation
    x_extra = jnp.mean(z_extra.reshape(S, B, IWAE, T, F), axis=2)  # (S, B, T, F)
    x_extra = jnp.transpose(x_extra, (1, 0, 2, 3))                  # (B, S, T, F)
    return x_extra, likelihood


if __name__ == "__main__":
    key = jax.random.PRNGKey(0)
    k_x, k_noise = jax.random.split(key, 2)

    # positive observations (> log 2 so softplus^-1 stays positive, like prices)
    x = 1.0 + 0.5 * jax.random.uniform(k_x, (B, S, L, F), dtype=jnp.float32)
    # strictly increasing, nonzero observation times
    base_t = jnp.linspace(0.1, 1.0, L, dtype=jnp.float32)
    t = jnp.broadcast_to(base_t[None, None, :, None], (B, S, L, 1)).astype(jnp.float32)
    mask = jnp.ones((B, S, L), jnp.float32)
    final_index = jnp.array([[L - 1, L - 2], [L - 3, L - 1]], dtype=jnp.int32)
    target_time = jnp.array([1.1, 1.2, 1.3, 1.4], dtype=jnp.float32)

    mu, sigma = make_params(S, F)

    fwd = jax.jit(strader_forward)
    x_extra, likelihood = fwd(
        x, t, mask, final_index, target_time, mu, sigma, k_noise)
    jax.block_until_ready((x_extra, likelihood))

    assert x_extra.shape == (B, S, T, F)
    assert likelihood.shape == (B,)
    assert bool(jnp.all(jnp.isfinite(x_extra))) and bool(jnp.all(jnp.isfinite(likelihood)))
    print("KERNEL_OK")
</pallas_src>

<mosaic_0001>
module attributes {stable_mosaic.version = 11 : i64} {
  func.func @strader_fused_kernel(%arg0: i32, %arg1: memref<1x2x8x4xf32, #tpu.memory_space<vmem>>, %arg2: memref<1x2x8xf32, #tpu.memory_space<vmem>>, %arg3: memref<1x2x8xf32, #tpu.memory_space<vmem>>, %arg4: memref<1x2x8xf32, #tpu.memory_space<vmem>>, %arg5: memref<1x4xf32, #tpu.memory_space<vmem>>, %arg6: memref<1x1x4xf32, #tpu.memory_space<vmem>>, %arg7: memref<1x1x4xf32, #tpu.memory_space<vmem>>, %arg8: memref<1x2x4x4x16xf32, #tpu.memory_space<vmem>>, %arg9: memref<1x1x2xf32, #tpu.memory_space<vmem>>, %arg10: memref<1x2x4x4xf32, #tpu.memory_space<vmem>>) attributes {dimension_semantics = [#tpu.dimension_semantics<parallel>], iteration_bounds = array<i64: 2>, scalar_prefetch = 0 : i64, scratch_operands = 0 : i64, tpu.core_type = #tpu.core_type<tc>, window_params = [{transform_indices = @transform_0, window_bounds = array<i64: 1, 2, 8, 4>}, {transform_indices = @transform_1, window_bounds = array<i64: 1, 2, 8>}, {transform_indices = @transform_2, window_bounds = array<i64: 1, 2, 8>}, {transform_indices = @transform_3, window_bounds = array<i64: 1, 2, 8>}, {pipeline_mode = #tpu.pipeline_mode<synchronous>, transform_indices = @transform_4, window_bounds = array<i64: 1, 4>}, {transform_indices = @transform_5, window_bounds = array<i64: 1, 1, 4>}, {transform_indices = @transform_6, window_bounds = array<i64: 1, 1, 4>}, {transform_indices = @transform_7, window_bounds = array<i64: 1, 2, 4, 4, 16>}, {transform_indices = @transform_8, window_bounds = array<i64: 1, 1, 2>}, {transform_indices = @transform_9, window_bounds = array<i64: 1, 2, 4, 4>}]} {
    %c0 = arith.constant 0 : index
    %c0_0 = arith.constant 0 : index
    %c0_1 = arith.constant 0 : index
    %c0_2 = arith.constant 0 : index
    %0 = vector.load %arg1[%c0, %c0_0, %c0_1, %c0_2] : memref<1x2x8x4xf32, #tpu.memory_space<vmem>>, vector<1x2x8x4xf32>
    %1 = vector.shape_cast %0 : vector<1x2x8x4xf32> to vector<2x8x4xf32>
    %c0_3 = arith.constant 0 : index
    %c0_4 = arith.constant 0 : index
    %c0_5 = arith.constant 0 : index
    %2 = vector.load %arg2[%c0_3, %c0_4, %c0_5] : memref<1x2x8xf32, #tpu.memory_space<vmem>>, vector<1x2x8xf32>
    %3 = vector.shape_cast %2 : vector<1x2x8xf32> to vector<2x8xf32>
    %c0_6 = arith.constant 0 : index
    %c0_7 = arith.constant 0 : index
    %c0_8 = arith.constant 0 : index
    %4 = vector.load %arg3[%c0_6, %c0_7, %c0_8] : memref<1x2x8xf32, #tpu.memory_space<vmem>>, vector<1x2x8xf32>
    %5 = vector.shape_cast %4 : vector<1x2x8xf32> to vector<2x8xf32>
    %c0_9 = arith.constant 0 : index
    %c0_10 = arith.constant 0 : index
    %c0_11 = arith.constant 0 : index
    %6 = vector.load %arg4[%c0_9, %c0_10, %c0_11] : memref<1x2x8xf32, #tpu.memory_space<vmem>>, vector<1x2x8xf32>
    %7 = vector.shape_cast %6 : vector<1x2x8xf32> to vector<2x8xf32>
    %c0_12 = arith.constant 0 : index
    %c0_13 = arith.constant 0 : index
    %8 = vector.load %arg5[%c0_12, %c0_13] : memref<1x4xf32, #tpu.memory_space<vmem>>, vector<1x4xf32>
    %c0_14 = arith.constant 0 : index
    %c0_15 = arith.constant 0 : index
    %c0_16 = arith.constant 0 : index
    %9 = vector.load %arg6[%c0_14, %c0_15, %c0_16] : memref<1x1x4xf32, #tpu.memory_space<vmem>>, vector<1x1x4xf32>
    %10 = vector.shape_cast %9 : vector<1x1x4xf32> to vector<1x4xf32>
    %c0_17 = arith.constant 0 : index
    %c0_18 = arith.constant 0 : index
    %c0_19 = arith.constant 0 : index
    %11 = vector.load %arg7[%c0_17, %c0_18, %c0_19] : memref<1x1x4xf32, #tpu.memory_space<vmem>>, vector<1x1x4xf32>
    %12 = vector.shape_cast %11 : vector<1x1x4xf32> to vector<1x4xf32>
    %c0_20 = arith.constant 0 : index
    %c0_21 = arith.constant 0 : index
    %c0_22 = arith.constant 0 : index
    %c0_23 = arith.constant 0 : index
    %c0_24 = arith.constant 0 : index
    %13 = vector.load %arg8[%c0_20, %c0_21, %c0_22, %c0_23, %c0_24] : memref<1x2x4x4x16xf32, #tpu.memory_space<vmem>>, vector<1x2x4x4x16xf32>
    %14 = vector.shape_cast %13 : vector<1x2x4x4x16xf32> to vector<2x4x4x16xf32>
    %cst = arith.constant 0.000000e+00 : f32
    %15 = vector.broadcast %cst : f32 to vector<2x8x4xf32>
    %16 = arith.subf %15, %1 : vector<2x8x4xf32>
    %17 = math.exp %16 : vector<2x8x4xf32>
    %cst_25 = arith.constant 1.000000e+00 : f32
    %18 = vector.broadcast %cst_25 : f32 to vector<2x8x4xf32>
    %19 = arith.subf %18, %17 : vector<2x8x4xf32>
    %20 = math.log %19 : vector<2x8x4xf32>
    %21 = arith.addf %1, %20 : vector<2x8x4xf32>
    %cst_26 = arith.constant dense<0.000000e+00> : vector<2x8xf32>
    %22 = vector.multi_reduction <add>, %20, %cst_26 [2] : vector<2x8x4xf32> to vector<2x8xf32>
    %23 = math.log %21 : vector<2x8x4xf32>
    %24 = vector.extract_strided_slice %23 {offsets = [0, 0, 0], sizes = [2, 7, 4], strides = [1, 1, 1]} : vector<2x8x4xf32> to vector<2x7x4xf32>
    %25 = vector.extract_strided_slice %23 {offsets = [0, 1, 0], sizes = [2, 7, 4], strides = [1, 1, 1]} : vector<2x8x4xf32> to vector<2x7x4xf32>
    %26 = vector.extract_strided_slice %3 {offsets = [0, 0], sizes = [2, 7], strides = [1, 1]} : vector<2x8xf32> to vector<2x7xf32>
    %27 = vector.extract_strided_slice %3 {offsets = [0, 1], sizes = [2, 7], strides = [1, 1]} : vector<2x8xf32> to vector<2x7xf32>
    %28 = arith.subf %27, %26 : vector<2x7xf32>
    %cst_27 = arith.constant 5.000000e-01 : f32
    %29 = vector.broadcast %cst_27 : f32 to vector<1x4xf32>
    %30 = arith.mulf %29, %12 : vector<1x4xf32>
    %31 = arith.mulf %30, %12 : vector<1x4xf32>
    %32 = arith.subf %10, %31 : vector<1x4xf32>
    %33 = math.log %12 : vector<1x4xf32>
    %34 = math.sqrt %28 : vector<2x7xf32>
    %cst_28 = arith.constant 2.000000e-05 : f32
    %35 = vector.broadcast %cst_28 : f32 to vector<2x7xf32>
    %36 = arith.maximumf %34, %35 : vector<2x7xf32>
    %37 = vector.shape_cast %32 : vector<1x4xf32> to vector<1x1x4xf32>
    %38 = vector.shape_cast %28 : vector<2x7xf32> to vector<2x7x1xf32>
    %39 = vector.broadcast %37 : vector<1x1x4xf32> to vector<2x7x4xf32>
    %40 = vector.broadcast %38 : vector<2x7x1xf32> to vector<2x7x4xf32>
    %41 = arith.mulf %39, %40 : vector<2x7x4xf32>
    %42 = arith.addf %24, %41 : vector<2x7x4xf32>
    %43 = vector.shape_cast %12 : vector<1x4xf32> to vector<1x1x4xf32>
    %44 = vector.shape_cast %36 : vector<2x7xf32> to vector<2x7x1xf32>
    %45 = vector.broadcast %43 : vector<1x1x4xf32> to vector<2x7x4xf32>
    %46 = vector.broadcast %44 : vector<2x7x1xf32> to vector<2x7x4xf32>
    %47 = arith.mulf %45, %46 : vector<2x7x4xf32>
    %48 = tpu.reciprocal %47 {approx = true} : vector<2x7x4xf32> -> vector<2x7x4xf32>
    %49 = vector.shape_cast %33 : vector<1x4xf32> to vector<1x1x4xf32>
    %50 = math.log %36 : vector<2x7xf32>
    %51 = vector.shape_cast %50 : vector<2x7xf32> to vector<2x7x1xf32>
    %52 = vector.broadcast %49 : vector<1x1x4xf32> to vector<2x7x4xf32>
    %53 = vector.broadcast %51 : vector<2x7x1xf32> to vector<2x7x4xf32>
    %54 = arith.addf %52, %53 : vector<2x7x4xf32>
    %55 = arith.subf %25, %42 : vector<2x7x4xf32>
    %56 = arith.mulf %55, %48 : vector<2x7x4xf32>
    %57 = arith.mulf %56, %56 : vector<2x7x4xf32>
    %cst_29 = arith.constant -5.000000e-01 : f32
    %58 = vector.broadcast %cst_29 : f32 to vector<2x7x4xf32>
    %59 = arith.mulf %58, %57 : vector<2x7x4xf32>
    %60 = arith.subf %59, %54 : vector<2x7x4xf32>
    %cst_30 = arith.constant 0.918938517 : f32
    %61 = vector.broadcast %cst_30 : f32 to vector<2x7x4xf32>
    %62 = arith.subf %60, %61 : vector<2x7x4xf32>
    %cst_31 = arith.constant 0.000000e+00 : f32
    %63 = vector.broadcast %cst_31 : f32 to vector<2x7xf32>
    %64 = arith.cmpf one, %27, %63 : vector<2x7xf32>
    %65 = arith.extui %64 : vector<2x7xi1> to vector<2x7xi32>
    %66 = arith.sitofp %65 : vector<2x7xi32> to vector<2x7xf32>
    %67 = vector.shape_cast %66 : vector<2x7xf32> to vector<2x7x1xf32>
    %68 = vector.broadcast %67 : vector<2x7x1xf32> to vector<2x7x4xf32>
    %69 = arith.mulf %62, %68 : vector<2x7x4xf32>
    %cst_32 = arith.constant dense<0.000000e+00> : vector<2x7xf32>
    %70 = vector.multi_reduction <add>, %69, %cst_32 [2] : vector<2x7x4xf32> to vector<2x7xf32>
    %71 = vector.extract_strided_slice %22 {offsets = [0, 1], sizes = [2, 7], strides = [1, 1]} : vector<2x8xf32> to vector<2x7xf32>
    %72 = arith.subf %70, %71 : vector<2x7xf32>
    %73 = vector.extract_strided_slice %5 {offsets = [0, 1], sizes = [2, 7], strides = [1, 1]} : vector<2x8xf32> to vector<2x7xf32>
    %74 = arith.mulf %72, %73 : vector<2x7xf32>
    %cst_33 = arith.constant dense<0.000000e+00> : vector<2xf32>
    %75 = vector.multi_reduction <add>, %74, %cst_33 [1] : vector<2x7xf32> to vector<2xf32>
    %cst_34 = arith.constant 7.000000e+00 : f32
    %76 = vector.broadcast %cst_34 : f32 to vector<2xf32>
    %77 = arith.divf %75, %76 : vector<2xf32>
    %78 = vector.shape_cast %77 : vector<2xf32> to vector<1x1x2xf32>
    %c0_35 = arith.constant 0 : index
    %c0_36 = arith.constant 0 : index
    %c0_37 = arith.constant 0 : index
    %79 = vector.load %arg9[%c0_35, %c0_36, %c0_37] : memref<1x1x2xf32, #tpu.memory_space<vmem>>, vector<1x1x2xf32>
    tpu.vector_store %arg9[%c0_35, %c0_36, %c0_37], %78 {strides = array<i32>} : memref<1x1x2xf32, #tpu.memory_space<vmem>>, vector<1x1x2xf32>,
    %80 = vector.shape_cast %7 : vector<2x8xf32> to vector<2x8x1xf32>
    %81 = vector.broadcast %80 : vector<2x8x1xf32> to vector<2x8x4xf32>
    %82 = arith.mulf %23, %81 : vector<2x8x4xf32>
    %cst_38 = arith.constant dense<0.000000e+00> : vector<2x4xf32>
    %83 = vector.multi_reduction <add>, %82, %cst_38 [1] : vector<2x8x4xf32> to vector<2x4xf32>
    %84 = vector.shape_cast %83 : vector<2x4xf32> to vector<2x1x4xf32>
    %85 = arith.mulf %3, %7 : vector<2x8xf32>
    %cst_39 = arith.constant dense<0.000000e+00> : vector<2xf32>
    %86 = vector.multi_reduction <add>, %85, %cst_39 [1] : vector<2x8xf32> to vector<2xf32>
    %87 = vector.shape_cast %86 : vector<2xf32> to vector<2x1xf32>
    %88 = vector.broadcast %8 : vector<1x4xf32> to vector<2x4xf32>
    %89 = vector.broadcast %87 : vector<2x1xf32> to vector<2x4xf32>
    %90 = arith.subf %88, %89 : vector<2x4xf32>
    %91 = math.sqrt %90 : vector<2x4xf32>
    %cst_40 = arith.constant 2.000000e-05 : f32
    %92 = vector.broadcast %cst_40 : f32 to vector<2x4xf32>
    %93 = arith.maximumf %91, %92 : vector<2x4xf32>
    %94 = vector.shape_cast %10 : vector<1x4xf32> to vector<1x1x4xf32>
    %95 = vector.shape_cast %90 : vector<2x4xf32> to vector<2x4x1xf32>
    %96 = vector.broadcast %94 : vector<1x1x4xf32> to vector<2x4x4xf32>
    %97 = vector.broadcast %95 : vector<2x4x1xf32> to vector<2x4x4xf32>
    %98 = arith.mulf %96, %97 : vector<2x4x4xf32>
    %99 = vector.broadcast %84 : vector<2x1x4xf32> to vector<2x4x4xf32>
    %100 = arith.addf %99, %98 : vector<2x4x4xf32>
    %101 = vector.shape_cast %12 : vector<1x4xf32> to vector<1x1x4xf32>
    %102 = vector.shape_cast %93 : vector<2x4xf32> to vector<2x4x1xf32>
    %103 = vector.broadcast %101 : vector<1x1x4xf32> to vector<2x4x4xf32>
    %104 = vector.broadcast %102 : vector<2x4x1xf32> to vector<2x4x4xf32>
    %105 = arith.mulf %103, %104 : vector<2x4x4xf32>
    %106 = vector.shape_cast %105 : vector<2x4x4xf32> to vector<2x4x4x1xf32>
    %107 = vector.broadcast %106 : vector<2x4x4x1xf32> to vector<2x4x4x16xf32>
    %108 = arith.mulf %107, %14 : vector<2x4x4x16xf32>
    %109 = math.exp %108 : vector<2x4x4x16xf32>
    %cst_41 = arith.constant dense<0.000000e+00> : vector<2x4x4xf32>
    %110 = vector.multi_reduction <add>, %109, %cst_41 [3] : vector<2x4x4x16xf32> to vector<2x4x4xf32>
    %cst_42 = arith.constant 1.600000e+01 : f32
    %111 = vector.broadcast %cst_42 : f32 to vector<2x4x4xf32>
    %112 = arith.divf %110, %111 : vector<2x4x4xf32>
    %113 = math.exp %100 : vector<2x4x4xf32>
    %114 = arith.mulf %113, %112 : vector<2x4x4xf32>
    %115 = vector.shape_cast %114 : vector<2x4x4xf32> to vector<1x2x4x4xf32>
    %c0_43 = arith.constant 0 : index
    %c0_44 = arith.constant 0 : index
    %c0_45 = arith.constant 0 : index
    %c0_46 = arith.constant 0 : index
    %116 = vector.load %arg10[%c0_43, %c0_44, %c0_45, %c0_46] : memref<1x2x4x4xf32, #tpu.memory_space<vmem>>, vector<1x2x4x4xf32>
    tpu.vector_store %arg10[%c0_43, %c0_44, %c0_45, %c0_46], %115 {strides = array<i32>} : memref<1x2x4x4xf32, #tpu.memory_space<vmem>>, vector<1x2x4x4xf32>,
    return
  }
  func.func @transform_0(%arg0: i32) -> (i32, i32, i32, i32) {
    %c0_i32 = arith.constant 0 : i32
    %c0_i32_0 = arith.constant 0 : i32
    %c0_i32_1 = arith.constant 0 : i32
    %c0_i32_2 = arith.constant 0 : i32
    return %arg0, %c0_i32, %c0_i32_0, %c0_i32_1 : i32, i32, i32, i32
  }
  func.func @transform_1(%arg0: i32) -> (i32, i32, i32) {
    %c0_i32 = arith.constant 0 : i32
    %c0_i32_0 = arith.constant 0 : i32
    %c0_i32_1 = arith.constant 0 : i32
    return %arg0, %c0_i32, %c0_i32_0 : i32, i32, i32
  }
  func.func @transform_2(%arg0: i32) -> (i32, i32, i32) {
    %c0_i32 = arith.constant 0 : i32
    %c0_i32_0 = arith.constant 0 : i32
    %c0_i32_1 = arith.constant 0 : i32
    return %arg0, %c0_i32, %c0_i32_0 : i32, i32, i32
  }
  func.func @transform_3(%arg0: i32) -> (i32, i32, i32) {
    %c0_i32 = arith.constant 0 : i32
    %c0_i32_0 = arith.constant 0 : i32
    %c0_i32_1 = arith.constant 0 : i32
    return %arg0, %c0_i32, %c0_i32_0 : i32, i32, i32
  }
  func.func @transform_4(%arg0: i32) -> (i32, i32) {
    %c0_i32 = arith.constant 0 : i32
    %c0_i32_0 = arith.constant 0 : i32
    %c0_i32_1 = arith.constant 0 : i32
    return %c0_i32, %c0_i32_0 : i32, i32
  }
  func.func @transform_5(%arg0: i32) -> (i32, i32, i32) {
    %c0_i32 = arith.constant 0 : i32
    %c0_i32_0 = arith.constant 0 : i32
    %c0_i32_1 = arith.constant 0 : i32
    return %arg0, %c0_i32, %c0_i32_0 : i32, i32, i32
  }
  func.func @transform_6(%arg0: i32) -> (i32, i32, i32) {
    %c0_i32 = arith.constant 0 : i32
    %c0_i32_0 = arith.constant 0 : i32
    %c0_i32_1 = arith.constant 0 : i32
    return %arg0, %c0_i32, %c0_i32_0 : i32, i32, i32
  }
  func.func @transform_7(%arg0: i32) -> (i32, i32, i32, i32, i32) {
    %c0_i32 = arith.constant 0 : i32
    %c0_i32_0 = arith.constant 0 : i32
    %c0_i32_1 = arith.constant 0 : i32
    %c0_i32_2 = arith.constant 0 : i32
    %c0_i32_3 = arith.constant 0 : i32
    return %arg0, %c0_i32, %c0_i32_0, %c0_i32_1, %c0_i32_2 : i32, i32, i32, i32, i32
  }
  func.func @transform_8(%arg0: i32) -> (i32, i32, i32) {
    %c0_i32 = arith.constant 0 : i32
    %c0_i32_0 = arith.constant 0 : i32
    %c0_i32_1 = arith.constant 0 : i32
    return %arg0, %c0_i32, %c0_i32_0 : i32, i32, i32
  }
  func.func @transform_9(%arg0: i32) -> (i32, i32, i32, i32) {
    %c0_i32 = arith.constant 0 : i32
    %c0_i32_0 = arith.constant 0 : i32
    %c0_i32_1 = arith.constant 0 : i32
    %c0_i32_2 = arith.constant 0 : i32
    return %arg0, %c0_i32, %c0_i32_0, %c0_i32_1 : i32, i32, i32, i32
  }
}

</mosaic_0001>

<bundles_post_ra>
// kernel: strader_forward.1
= control target key start
LH: loop header
LB: loop body
LE: loop exit
PB: predicated region body
PF: predicated region fallthrough
CT: control target
= control target key end

     0   :  { %s1237_s30 = smov 0   ;;  %s1428_s0 = inlined_call_operand.vmem [shape: f32[2,2,8,4], index: 0, kind: input, shape index: {}]   ;;  %s1429_s1 = inlined_call_operand.vmem [shape: f32[2,2,8], index: 1, kind: input, shape index: {}]   ;;  %s1430_s2 = inlined_call_operand.vmem [shape: f32[2,2,8], index: 2, kind: input, shape index: {}]   ;;  %s1431_s3 = inlined_call_operand.vmem [shape: f32[2,2,8], index: 3, kind: input, shape index: {}]   ;;  %s1432_s4 = inlined_call_operand.vmem [shape: f32[1,4], index: 4, kind: input, shape index: {}]   ;;  %s1433_s5 = inlined_call_operand.vmem [shape: f32[2,1,4], index: 5, kind: input, shape index: {}]   ;;  %s1434_s6 = inlined_call_operand.vmem [shape: f32[2,1,4], index: 6, kind: input, shape index: {}]   ;;  %s1435_s7 = inlined_call_operand.vmem [shape: f32[2,2,4,4,16], index: 7, kind: input, shape index: {}]   ;;  %s1436_s8 = inlined_call_operand.vmem [shape: f32[2,1,2], index: 8, kind: output, shape index: {0}]   ;;  %s1437_s9 = inlined_call_operand.vmem [shape: f32[2,2,4,4], index: 9, kind: output, shape index: {1}]  }
   0x1 LB: > { %s1074_s10 = sadd.s32 4294967295, %s1180_s30   ;;  %p1078_p0 = scmp.ge.s32.totalorder %s1180_s30, 1  ;;  %s1180_s30 = sphi %s1237_s30, %s20_s30  }
   0x2   : > { %p343_p1 = scmp.lt.s32.totalorder %s1180_s30, 3 }
   0x4   : > { %p344_p2 = pnand %p1078_p0, %p343_p1 }
   0x5   : > { %p405_p3 = scmp.lt.s32.totalorder (!%p344_p2), %s1074_s10, 1  ;;  %s1182_s15 = smov (!%p344_p2), 1  }
   0x6   : > { %347 = sbr.rel (%p344_p2) target bundleno = 883 (0x373), region = 52 }
   0xb   : > { %v506_v0 = vlaneseq  ;;  %s1439_s10 = smov (!%p405_p3, %s1074_s10), 1  ;;  %vm471_vm0 = vcmask 31744   ;;  %v1183_v24 = vmov 0.0   ;;  %vm715_vm4 = vcmask 58368  }
   0xc   : > { %s1251_s11 = sshll.u32 %s1439_s10, 1  ;;  %s1093_s16 = sshll.u32 %s1439_s10, 4  ;;  %vm623_vm7 = vcmask 31745   ;;  %vm853_vm8 = vcmask 125952   ;;  %vm667_vm9 = vcmask 50176   ;;  %vm664_vm10 = vcmask 1041409  }
   0xd   : > { %v1248_v1 = vshrl.u32 %v506_v0, 7  ;;  %s413_s14 = scalar_lea.vmem %s1429_s1, %s1251_s11  ;;  %s409_s19 = scalar_lea.vmem %s1428_s0, %s1093_s16  ;;  %vm914_vm12 = vcmask 1042434   ;;  %vm916_vm13 = vcmask 1043459   ;;  %vm925_vm14 = vcmask 27648  }
   0xe   : > { %v1260_v3 = vld [vmem:[%s413_s14] sm:$0x3]  ;;  %v442_v7 = vld [vmem:[%s409_s19 + $0x8] sm:$0xff]  ;;  %s421_s22 = scalar_lea.vmem %s1431_s3, %s1251_s11  ;;  %s427_s25 = scalar_lea.vmem %s1434_s6, %s1439_s10 }
   0xf   : > { %v1254_v2 = vadd.s32 1, %v1248_v1  ;;  %483 = vrot.lane.b32.xlu1 %v1260_v3, %s1182_s15  ;;  %v441_v4 = vld [vmem:[%s409_s19] sm:$0xff]  ;;  %v458_v8 = vsub.f32 0.0, %v442_v7  ;;  %vm598_vm1 = vcmp.ne.f32.partialorder %v1260_v3, 0.0  ;;  %s1297_s28 = scalar_lea.vmem %s1433_s5, %s1439_s10  ;;  %s417_s13 = scalar_lea.vmem %s1430_s2, %s1251_s11 }
  0x10   : > { %v457_v5 = vsub.f32 0.0, %v441_v4  ;;  %v1090_v25 = vsel %vm598_vm1, 1.0, %v1183_v24  ;;  %v445_v47 = vld [vmem:[%s421_s22] sm:$0x3]  ;;  %s1094_s15 = sshll.u32 %s1439_s10, 5  ;;  %s1095_s19 = sshll.u32 %s1439_s10, 3 }
  0x11   : > { %1110 = vset.pattern.permute.xlu2 %v1254_v2  ;;  %1109 = vset.pattern.permute.xlu1 %v1254_v2  ;;  %v461_v10 = vmul.f32 1.442695, %v458_v8  ;;  %v601_v28 = vperm.slane %v1090_v25, 0  ;;  %v608_v29 = vperm.slane %v1090_v25, 1  ;;  %v714_v48 = vmul.f32 %v445_v47, %v1260_v3  ;;  %v448_v50 = vld [vmem:[%s427_s25] sm:$0x1]  ;;  %s1359_s18 = scalar_lea.vmem %s1435_s7, %s1094_s15  ;;  %s1401_s22 = scalar_lea.vmem %s1437_s9, %s1095_s19 }
  0x12   : > { %1111 = vset.pattern.permute.xlu0 %v1254_v2  ;;  %v459_v6 = vmul.f32 1.442695, %v457_v5  ;;  %v487_v51 = vmul.f32 0.5, %v448_v50  ;;  %v447_v54 = vld [vmem:[%s1297_s28] sm:$0x1]  ;;  %v684_v5 = vperm.slane %v445_v47, 0 }
  0x13   : > { %v1112_v31 = vpack.i.bf16 %v608_v29, %v601_v28  ;;  %v716_v49 = vsel %vm715_vm4, %v714_v48, 0.0  ;;  %v1304_v55 = vld [vmem:[%s427_s25] ss:$0 sm:$0xff]  ;;  %s435_s25 = scalar_lea.vmem %s1436_s8, %s1439_s10 }
  0x14   : > { %1126 = vpow2.f32 %v459_v6  ;;  %v488_v53 = vmul.f32 %v487_v51, %v448_v50  ;;  %v444_v58 = vld [vmem:[%s417_s13] sm:$0x3] }
  0x15   : > { %1128 = vpow2.f32 %v461_v10  ;;  %v640_v59 = vperm.slane %v444_v58, 1  ;;  %v691_v10 = vperm.slane %v445_v47, 1  ;;  %v633_v28 = vperm.slane %v444_v58, 0  ;;  %v1124_v29 = vld [vmem:[%s1432_s4] ss:$0 sm:$0xff] }
  0x16   : > { %v489_v56 = vsub.f32 %v447_v54, %v488_v53 }
  0x18   : > { %v1307_v63 = vperm.slane %v489_v56, 0 }
  0x1a   : > { %v1127_v9 = vpop.eup %1126 }
  0x1b   : > { %v463_v11 = vsub.f32 1.0, %v1127_v9  ;;  %v1129_v12 = vpop.eup %1128 }
  0x1c   : > { %v464_v14 = vsub.f32 1.0, %v1129_v12 }
  0x1d   : > { %1130 = vlog2.f32 %v463_v11 }
  0x1e   : > { %1132 = vlog2.f32 %v464_v14 }
  0x23   : > { %v1131_v13 = vpop.eup %1130 }
  0x24   : > { %v466_v15 = vmul.f32 0.6931472, %v1131_v13  ;;  %v1133_v18 = vpop.eup %1132 }
  0x25   : > { %v468_v19 = vmul.f32 0.6931472, %v1133_v18 }
  0x26   : > { %v472_v16 = vsel %vm471_vm0, %v466_v15, 0.0  ;;  %v469_v17 = vadd.f32 %v466_v15, %v441_v4 }
  0x27   : > { %473 = vadd.xlane.f32.xlu0 %v472_v16  ;;  %v1271_v20 = vadd.f32 %v468_v19, %v442_v7  ;;  %v475_v21 = vsel %vm471_vm0, %v468_v19, 0.0 }
  0x2f   : > { %476 = vadd.xlane.f32.xlu0 %v475_v21 }
  0x81   : > { %v484_v22 = vpop.permute.xlu1 %483 }
  0x82   : > { %v486_v23 = vsub.f32 %v1260_v3, %v484_v22 }
  0x84   : > { %v512_v26 = vperm.slane %v486_v23, 1  ;;  %v505_v27 = vperm.slane %v486_v23, 0  ;;  %1134 = vrsqrt.f32 %v486_v23  ;;  %vm499_vm2 = vcmp.eq.f32.partialorder %v486_v23, inf }
  0x85   : > { %v502_v38 = vand.u32 2147483648, %v486_v23  ;;  %vm501_vm3 = vcmp.eq.f32.partialorder %v486_v23, 0.0 }
  0x86   : > { %517 = vperm.xlu2 %1110, %v512_v26   ;;  %510 = vperm.xlu1 %1109, %v505_v27  }
  0x8a   : > { %v1135_v30 = vpop.eup %1134 }
  0x8b   : > { %v493_v32 = vmul.f32 %v1135_v30, %v486_v23 }
  0x8d   : > { %v494_v33 = vmul.f32 %v1135_v30, %v493_v32 }
  0x8e   : > { %1113 = vperm.xlu1 %1109, %v1112_v31  }
  0x8f   : > { %v495_v34 = vmul.f32 0.5, %v494_v33 }
  0x91   : > { %v496_v35 = vsub.f32 1.5, %v495_v34 }
  0x93   : > { %v497_v36 = vmul.f32 %v1135_v30, %v496_v35 }
  0x95   : > { %v498_v37 = vmul.f32 %v497_v36, %v486_v23 }
  0x97   : > { %v500_v39 = vsel %vm499_vm2, %v486_v23, %v498_v37 }
  0x98   : > { %v503_v40 = vsel %vm501_vm3, %v502_v38, %v500_v39 }
  0x99   : > { %v504_v41 = vmax.f32 %v503_v40, 2e-05 }
  0x9b   : > { %v526_v42 = vperm.slane %v504_v41, 0  ;;  %v533_v43 = vperm.slane %v504_v41, 1  ;;  %1136 = vlog2.f32 %v504_v41 }
  0x9c   : > { %1138 = vlog2.f32 %v469_v17 }
  0x9d   : > { %531 = vperm.xlu2 %1110, %v526_v42   ;;  %538 = vperm.xlu0 %1111, %v533_v43  }
  0xa1   : > { %v1137_v44 = vpop.eup %1136 }
  0xa2   : > { %v1276_v45 = vmul.f32 0.6931472, %v1137_v44  ;;  %v1139_v60 = vpop.eup %1138 }
  0xa3   : > { %v479_v3 = vmul.f32 0.6931472, %v1139_v60 }
  0xa4   : > { %v549_v46 = vperm.slane %v1276_v45, 0  ;;  %v556_v48 = vperm.slane %v1276_v45, 1 }
  0xa5   : > { %1117 = vset.pattern.permute.xlu2 %v1248_v1  ;;  %1119 = vset.pattern.permute.xlu0 %v1248_v1 }
  0xa6   : > { %554 = vperm.xlu1 %1109, %v549_v46  }
  0xad   : > { %638 = vperm.xlu2 %1117, %v633_v28  }
  0xae   : > { %1118 = vset.pattern.permute.xlu1 %v1248_v1 }
  0xd0   : > { %717 = vadd.xlane.f32.xlu1 %v716_v49 }
  0xe0   : > { %v1291_v52 = vpop.permute.xlu2 %517 }
  0xe9   : > { %645 = vperm.xlu1 %1118, %v640_v59  }
  0xf1   : > { %689 = vperm.xlu1 %1118, %v684_v5  }
  0xf7   : > { %v532_v57 = vpop.permute.xlu2 %531 }
  0xf8   : > { %v543_v61 = vmul.f32 %v1304_v55, %v532_v57  ;;  %v511_v62 = vpop.permute.xlu1 %510 }
  0xf9   : > { %v522_v4 = vmul.f32 %v1307_v63, %v511_v62  ;;  %696 = vperm.xlu1 %1118, %v691_v10  }
  0xfa   : > { %1140 = vrcp.f32 %v543_v61 }
  0xfb   : > { %1142 = vlog2.f32 %v448_v50  ;;  %v524_v6 = vadd.f32 %v522_v4, %v479_v3  ;;  %v1328_v50 = vpop.xlane.xlu0 %473 }
  0xfd   : > { %v570_v8 = vrot.slane %v524_v6, 7 }
  0xff   : > { %v574_v13 = vsub.f32 %v479_v3, %v570_v8  ;;  %v523_v8 = vmul.f32 %v1307_v63, %v1291_v52 }
 0x100   : > { %v1141_v7 = vpop.eup %1140  ;;  %v1310_v12 = vpop.permute.xlu1 %1113 }
 0x101   : > { %v1143_v9 = vpop.eup %1142  ;;  %v578_v11 = vrot.slane %v1141_v7, 7  ;;  %v1115_v21 = vunpack.i.l.bf16 %v1310_v12 }
 0x102   : > { %v1312_v14 = vmul.f32 0.6931472, %v1143_v9 }
 0x103   : > { %v582_v15 = vmul.f32 %v578_v11, %v574_v13  ;;  %v617_v25 = vrot.slane %v1115_v21, 7  ;;  %v1331_v57 = vpop.xlane.xlu0 %476 }
 0x104   : > { %v564_v16 = vperm.slane %v1312_v14, 0 }
 0x105   : > { %v584_v17 = vmul.f32 %v582_v15, %v582_v15 }
 0x107   : > { %v586_v22 = vmul.f32 -0.5, %v584_v17  ;;  %v1333_v58 = vpop.permute.xlu2 %638 }
 0x10f   : > { %v539_v45 = vpop.permute.xlu0 %538 }
 0x118   : > { %v555_v18 = vpop.permute.xlu1 %554 }
 0x119   : > { %v566_v19 = vadd.f32 %v564_v16, %v555_v18 }
 0x11b   : > { %v590_v23 = vrot.slane %v566_v19, 7 }
 0x11d   : > { %v594_v24 = vsub.f32 %v586_v22, %v590_v23 }
 0x11f   : > { %v1088_v26 = vadd.f32 -0.9189385, %v594_v24 }
 0x121   : > { %v1318_v27 = vmul.f32 %v1088_v26, %v617_v25  ;;  %v1116_v26 = vunpack.i.h.bf16 %v1310_v12 }
 0x143   : > { %v718_v30 = vpop.xlane.xlu1 %717 }
 0x144   : > { %v722_v31 = vsub.f32 %v1124_v29, %v718_v30 }
 0x146   : > { %v743_v32 = vperm.slane %v722_v31, 1  ;;  %1144 = vrsqrt.f32 %v722_v31  ;;  %vm730_vm5 = vcmp.eq.f32.partialorder %v722_v31, inf  ;;  %v733_v40 = vand.u32 2147483648, %v722_v31 }
 0x147   : > { %vm732_vm6 = vcmp.eq.f32.partialorder %v722_v31, 0.0  ;;  %v736_v47 = vperm.slane %v722_v31, 0  ;;  %1146 = vlog2.f32 %v1271_v20  ;;  %v1343_v20 = vld [vmem:[%s1297_s28] ss:$0 sm:$0xff] }
 0x148   : > { %748 = vperm.xlu1 %1118, %v743_v32  }
 0x14c   : > { %v1145_v33 = vpop.eup %1144 }
 0x14d   : > { %v724_v34 = vmul.f32 %v1145_v33, %v722_v31  ;;  %v1147_v62 = vpop.eup %1146 }
 0x14e   : > { %v1338_v7 = vmul.f32 0.6931472, %v1147_v62 }
 0x14f   : > { %v725_v35 = vmul.f32 %v1145_v33, %v724_v34 }
 0x150   : > { %v525_v11 = vadd.f32 %v523_v8, %v1338_v7 }
 0x151   : > { %v726_v36 = vmul.f32 0.5, %v725_v35 }
 0x152   : > { %v571_v18 = vrot.slane %v525_v11, 7 }
 0x153   : > { %v727_v37 = vsub.f32 1.5, %v726_v36 }
 0x154   : > { %v575_v21 = vsub.f32 %v1338_v7, %v571_v18 }
 0x155   : > { %v728_v38 = vmul.f32 %v1145_v33, %v727_v37  ;;  %v618_v33 = vrot.slane %v1116_v26, 7  ;;  %v456_v26 = vld [vmem:[%s1359_s18 + $0x1c] sm:$0xf] }
 0x157   : > { %v729_v39 = vmul.f32 %v728_v38, %v722_v31  ;;  %v449_v38 = vld [vmem:[%s1359_s18] sm:$0xf] }
 0x159   : > { %v731_v41 = vsel %vm730_vm5, %v722_v31, %v729_v39 }
 0x15a   : > { %v734_v42 = vsel %vm732_vm6, %v733_v40, %v731_v41 }
 0x15b   : > { %v735_v43 = vmax.f32 %v734_v42, 2e-05  ;;  %v1326_v49 = vpop.permute.xlu1 %645 }
 0x15d   : > { %v757_v44 = vperm.slane %v735_v43, 0  ;;  %v764_v46 = vperm.slane %v735_v43, 1  ;;  %v453_v43 = vld [vmem:[%s1359_s18 + $0x10] sm:$0xf] }
 0x15f   : > { %762 = vperm.xlu2 %1117, %v757_v44   ;;  %769 = vperm.xlu0 %1119, %v764_v46  }
 0x163   : > { %v690_v51 = vpop.permute.xlu1 %689 }
 0x164   : > { %v698_v53 = vmul.f32 %v690_v51, %v479_v3  ;;  %v544_v3 = vmul.f32 %v1304_v55, %v539_v45  ;;  %v452_v45 = vld [vmem:[%s1359_s18 + $0xc] sm:$0xf] }
 0x166   : > { %v700_v54 = vsel %vm471_vm0, %v698_v53, 0.0  ;;  %1148 = vrcp.f32 %v544_v3 }
 0x167   : > { %741 = vperm.xlu2 %1117, %v736_v47   ;;  %v701_v56 = vrot.slane %v700_v54, 4 }
 0x169   : > { %v702_v59 = vadd.f32 %v701_v56, %v700_v54 }
 0x16b   : > { %v1364_v44 = vpop.permute.xlu1 %696 }
 0x16c   : > { %v1149_v17 = vpop.eup %1148 }
 0x16d   : > { %v579_v19 = vrot.slane %v1149_v17, 7 }
 0x16f   : > { %1120 = vset.pattern.permute.xlu2 %v1254_v2  ;;  %v703_v2 = vrot.slane %v702_v59, 2  ;;  %v583_v22 = vmul.f32 %v579_v19, %v575_v21 }
 0x171   : > { %v585_v52 = vmul.f32 %v583_v22, %v583_v22  ;;  %v450_v22 = vld [vmem:[%s1359_s18 + $0x4] sm:$0xf] }
 0x173   : > { %v587_v28 = vmul.f32 -0.5, %v585_v52 }
 0x177   : > { %561 = vperm.xlu2 %1120, %v556_v48  }
 0x17f   : > { %1121 = vset.pattern.permute.xlu2 %v1248_v1  ;;  %v704_v1 = vadd.f32 %v703_v2, %v702_v59  ;;  %v454_v2 = vld [vmem:[%s1359_s18 + $0x14] sm:$0xf] }
 0x181   : > { %v705_v6 = vrot.slane %v704_v1, 1 }
 0x183   : > { %v706_v9 = vadd.f32 %v705_v6, %v704_v1 }
 0x1b9   : > { %v763_v60 = vpop.permute.xlu2 %762 }
 0x1ba   : > { %v771_v61 = vmul.f32 %v1304_v55, %v763_v60  ;;  %v1366_v51 = vpop.permute.xlu1 %748 }
 0x1bc   : > { %v780_v4 = vperm.slane %v771_v61, 1  ;;  %v773_v5 = vperm.slane %v771_v61, 0  ;;  %v787_v14 = vperm.slane %v771_v61, 2 }
 0x1be   : > { %785 = vperm.xlu1 %1118, %v780_v4   ;;  %778 = vperm.xlu2 %1121, %v773_v5  }
 0x1c1   : > { %v742_v10 = vpop.permute.xlu2 %741 }
 0x1c2   : > { %v753_v13 = vmul.f32 %v1343_v20, %v742_v10  ;;  %v1184_v10 = vmov 0  }
 0x1c4   : > { %v1347_v15 = vadd.f32 %v753_v13, %v706_v9 }
 0x1d1   : > { %v562_v63 = vpop.permute.xlu2 %561  ;;  %v770_v23 = vpop.permute.xlu0 %769 }
 0x1d2   : > { %v567_v24 = vadd.f32 %v564_v16, %v562_v63  ;;  %v772_v25 = vmul.f32 %v1304_v55, %v770_v23  ;;  %v794_v55 = vperm.slane %v771_v61, 3  ;;  %v624_v16 = vsel %vm623_vm7, %v1318_v27, 0.0  ;;  %v451_v23 = vld [vmem:[%s1359_s18 + $0x8] sm:$0xf] }
 0x1d4   : > { %v591_v29 = vrot.slane %v567_v24, 7  ;;  %v808_v30 = vperm.slane %v772_v25, 1  ;;  %v801_v31 = vperm.slane %v772_v25, 0  ;;  %v815_v37 = vperm.slane %v772_v25, 2 }
 0x1d5   : > { %v822_v12 = vperm.slane %v772_v25, 3 }
 0x1d6   : > { %v595_v32 = vsub.f32 %v587_v28, %v591_v29  ;;  %813 = vperm.xlu1 %1118, %v808_v30   ;;  %806 = vperm.xlu2 %1121, %v801_v31  }
 0x1d8   : > { %v1089_v34 = vadd.f32 -0.9189385, %v595_v32 }
 0x1da   : > { %v622_v35 = vmul.f32 %v1089_v34, %v618_v33  ;;  %v455_v33 = vld [vmem:[%s1359_s18 + $0x18] sm:$0xf] }
 0x1dc   : > { %v627_v36 = vsel %vm623_vm7, %v622_v35, 0.0 }
 0x1dd   : > { %628 = vadd.xlane.f32.xlu0 %v627_v36  ;;  %v1385_v36 = vand.u32 127, %v506_v0  ;;  %v1185_v0 = vmov 16.0  }
 0x1de   : > { %820 = vperm.xlu1 %1118, %v815_v37   ;;  %792 = vperm.xlu2 %1121, %v787_v14  }
 0x1df   : > { %v661_v14 = vadd.s32 1, %v1385_v36 }
 0x1e6   : > { %799 = vperm.xlu2 %1121, %v794_v55  }
 0x1ee   : > { %1122 = vset.pattern.permute.xlu2 %v1184_v10 }
 0x1f1   : > { %827 = vperm.xlu0 %1119, %v822_v12  }
 0x20f   : > { %625 = vadd.xlane.f32.xlu2 %v624_v16 }
 0x218   : > { %v779_v39 = vpop.permute.xlu2 %778 }
 0x219   : > { %v829_v40 = vmul.f32 %v779_v39, %v449_v38 }
 0x21b   : > { %v837_v41 = vmul.f32 1.442695, %v829_v40 }
 0x21d   : > { %1150 = vpow2.f32 %v837_v41 }
 0x223   : > { %v1151_v42 = vpop.eup %1150 }
 0x224   : > { %v854_v27 = vsel %vm853_vm8, %v1151_v42, 0.0 }
 0x225   : > { %855 = vadd.xlane.f32.xlu1 %v854_v27 }
 0x230   : > { %v807_v46 = vpop.permute.xlu2 %806  ;;  %v786_v59 = vpop.permute.xlu1 %785 }
 0x231   : > { %v833_v47 = vmul.f32 %v807_v46, %v453_v43  ;;  %v830_v52 = vmul.f32 %v786_v59, %v450_v22 }
 0x233   : > { %v845_v48 = vmul.f32 1.442695, %v833_v47  ;;  %v839_v63 = vmul.f32 1.442695, %v830_v52 }
 0x235   : > { %1152 = vpow2.f32 %v845_v48 }
 0x238   : > { %v793_v56 = vpop.permute.xlu2 %792 }
 0x239   : > { %v831_v24 = vmul.f32 %v793_v56, %v451_v23 }
 0x23b   : > { %v1153_v53 = vpop.eup %1152  ;;  %v841_v25 = vmul.f32 1.442695, %v831_v24 }
 0x23c   : > { %v866_v54 = vsel %vm853_vm8, %v1153_v53, 0.0 }
 0x23d   : > { %867 = vadd.xlane.f32.xlu0 %v866_v54 }
 0x240   : > { %v800_v1 = vpop.permute.xlu2 %799 }
 0x241   : > { %v832_v62 = vmul.f32 %v800_v1, %v452_v45 }
 0x243   : > { %v843_v4 = vmul.f32 1.442695, %v832_v62 }
 0x248   : > { %v814_v60 = vpop.permute.xlu1 %813 }
 0x249   : > { %v834_v61 = vmul.f32 %v814_v60, %v454_v2  ;;  %v893_v2 = vmul.f32 1.442695, %v1347_v15 }
 0x24b   : > { %v847_v3 = vmul.f32 1.442695, %v834_v61 }
 0x24d   : > { %1154 = vpow2.f32 %v847_v3 }
 0x24e   : > { %1156 = vpow2.f32 %v843_v4 }
 0x24f   : > { %1158 = vpow2.f32 %v839_v63 }
 0x250   : > { %v629_v18 = vpop.xlane.xlu0 %628  ;;  %1160 = vpow2.f32 %v841_v25  ;;  %v821_v34 = vpop.permute.xlu1 %820 }
 0x251   : > { %v631_v19 = vsub.f32 %v629_v18, %v1331_v57  ;;  %v835_v37 = vmul.f32 %v821_v34, %v455_v33 }
 0x253   : > { %v1155_v5 = vpop.eup %1154  ;;  %v650_v21 = vmul.f32 %v1326_v49, %v631_v19  ;;  %v849_v55 = vmul.f32 1.442695, %v835_v37  ;;  %v1186_v19 = vmov 7.0  }
 0x254   : > { %v869_v6 = vsel %vm853_vm8, %v1155_v5, 0.0  ;;  %v1157_v8 = vpop.eup %1156 }
 0x255   : > { %870 = vadd.xlane.f32.xlu1 %v869_v6  ;;  %v863_v9 = vsel %vm853_vm8, %v1157_v8, 0.0 }
 0x25d   : > { %864 = vadd.xlane.f32.xlu1 %v863_v9 }
 0x263   : > { %v828_v28 = vpop.permute.xlu0 %827 }
 0x282   : > { %v626_v11 = vpop.xlane.xlu2 %625 }
 0x283   : > { %v630_v13 = vsub.f32 %v626_v11, %v1328_v50  ;;  %v1159_v50 = vpop.eup %1158 }
 0x284   : > { %v857_v29 = vsel %vm853_vm8, %v1159_v50, 0.0  ;;  %v1161_v30 = vpop.eup %1160 }
 0x285   : > { %v649_v17 = vmul.f32 %v1333_v58, %v630_v13  ;;  %v836_v58 = vmul.f32 %v828_v28, %v456_v26  ;;  %v860_v49 = vsel %vm853_vm8, %v1161_v30, 0.0 }
 0x287   : > { %654 = vperm.xlu2 %1122, %v649_v17   ;;  %v851_v57 = vmul.f32 1.442695, %v836_v58  ;;  %v699_v17 = vmul.f32 %v1364_v44, %v1338_v7  ;;  %v754_v7 = vmul.f32 %v1343_v20, %v1366_v51 }
 0x289   : > { %1162 = vpow2.f32 %v851_v57  ;;  %v707_v18 = vsel %vm471_vm0, %v699_v17, 0.0  ;;  %vm682_vm0 = vcmask 8192  }
 0x28a   : > { %1164 = vpow2.f32 %v849_v55 }
 0x28b   : > { %1166 = vrcp.f32 %v1185_v0 }
 0x28c   : > { %1168 = vpow2.f32 %v893_v2 }
 0x28d   : > { %1170 = vrcp.f32 %v1186_v19 }
 0x28f   : > { %657 = vperm.xlu2 %1122, %v650_v21   ;;  %v1163_v31 = vpop.eup %1162  ;;  %v708_v21 = vrot.slane %v707_v18, 4 }
 0x290   : > { %v875_v32 = vsel %vm853_vm8, %v1163_v31, 0.0  ;;  %v1165_v41 = vpop.eup %1164 }
 0x291   : > { %v872_v42 = vsel %vm853_vm8, %v1165_v41, 0.0  ;;  %v1167_v27 = vpop.eup %1166  ;;  %v709_v52 = vadd.f32 %v708_v21, %v707_v18 }
 0x292   : > { %v879_v43 = vmul.f32 16.0, %v1167_v27  ;;  %vm883_vm11 = vweird.f32 %v1167_v27  ;;  %v1169_v10 = vpop.eup %1168 }
 0x293   : > { %v1171_v22 = vpop.eup %1170  ;;  %v710_v23 = vrot.slane %v709_v52, 2 }
 0x294   : > { %v880_v47 = vsub.f32 1.0, %v879_v43  ;;  %v672_v63 = vmul.f32 7.0, %v1171_v22  ;;  %vm676_vm15 = vweird.f32 %v1171_v22 }
 0x295   : > { %v711_v25 = vadd.f32 %v710_v23, %v709_v52 }
 0x296   : > { %v881_v48 = vmul.f32 %v1167_v27, %v880_v47  ;;  %v673_v24 = vsub.f32 1.0, %v672_v63 }
 0x297   : > { %v712_v28 = vrot.slane %v711_v25, 1 }
 0x298   : > { %v856_v46 = vpop.xlane.xlu1 %855  ;;  %v882_v54 = vadd.f32 %v1167_v27, %v881_v48  ;;  %v674_v26 = vmul.f32 %v1171_v22, %v673_v24 }
 0x29a   : > { %v884_v59 = vsel %vm883_vm11, %v1167_v27, %v882_v54  ;;  %v675_v58 = vadd.f32 %v1171_v22, %v674_v26 }
 0x29b   : > { %v885_v60 = vmul.f32 %v884_v59, %v856_v46 }
 0x29c   : > { %v677_v44 = vsel %vm676_vm15, %v1171_v22, %v675_v58 }
 0x29d   : > { %v905_v5 = vperm.slane %v885_v60, %v1385_v36 }
 0x2b0   : > { %v868_v50 = vpop.xlane.xlu0 %867 }
 0x2b8   : > { %858 = vadd.xlane.f32.xlu2 %v857_v29  ;;  %v713_v29 = vadd.f32 %v712_v28, %v711_v25 }
 0x2ba   : > { %v756_v57 = vadd.f32 %v754_v7, %v713_v29 }
 0x2c0   : > { %861 = vadd.xlane.f32.xlu2 %v860_v49 }
 0x2c8   : > { %876 = vadd.xlane.f32.xlu2 %v875_v32  ;;  %v871_v53 = vpop.xlane.xlu1 %870  ;;  %v895_v32 = vmul.f32 1.442695, %v756_v57 }
 0x2c9   : > { %v890_v33 = vmul.f32 %v884_v59, %v871_v53 }
 0x2ca   : > { %1172 = vpow2.f32 %v895_v32 }
 0x2cb   : > { %v910_v20 = vperm.slane %v890_v33, %v1385_v36 }
 0x2d0   : > { %v865_v1 = vpop.xlane.xlu1 %864 }
 0x2d1   : > { %v888_v61 = vmul.f32 %v884_v59, %v865_v1 }
 0x2d3   : > { %v908_v8 = vperm.slane %v888_v61, %v1385_v36 }
 0x2e1   : > { %v655_v35 = vpop.permute.xlu2 %654 }
 0x2e2   : > { %v662_v16 = vperm.slane %v655_v35, %v661_v14  ;;  %v889_v35 = vmul.f32 %v884_v59, %v868_v50 }
 0x2e4   : > { %v909_v55 = vperm.slane %v889_v35, %v1385_v36 }
 0x2e9   : > { %v658_v12 = vpop.permute.xlu2 %657 }
 0x2ea   : > { %v663_v38 = vperm.slane %v658_v12, %v661_v14 }
 0x2ec   : > { %v665_v39 = vsel %vm664_vm10, %v663_v38, %v662_v16  ;;  %v918_v16 = vsel %vm664_vm10, %v910_v20, %v909_v55 }
 0x2ed   : > { %v668_v40 = vsel %vm667_vm9, %v665_v39, 0.0 }
 0x2ee   : > { %669 = vadd.xlane.f32.xlu0 %v668_v40  ;;  %v1173_v40 = vpop.eup %1172 }
 0x2f6   : > { %873 = vadd.xlane.f32.xlu0 %v872_v42 }
 0x32b   : > { %v859_v56 = vpop.xlane.xlu2 %858 }
 0x32c   : > { %v886_v45 = vmul.f32 %v884_v59, %v859_v56 }
 0x32e   : > { %v906_v62 = vperm.slane %v886_v45, %v1385_v36 }
 0x330   : > { %v913_v15 = vsel %vm664_vm10, %v906_v62, %v905_v5 }
 0x333   : > { %v862_v3 = vpop.xlane.xlu2 %861 }
 0x334   : > { %v887_v4 = vmul.f32 %v884_v59, %v862_v3 }
 0x336   : > { %v907_v6 = vperm.slane %v887_v4, %v1385_v36 }
 0x338   : > { %v915_v9 = vsel %vm914_vm12, %v907_v6, %v913_v15 }
 0x339   : > { %v917_v11 = vsel %vm916_vm13, %v908_v8, %v915_v9 }
 0x33a   : > { %v923_v13 = vmul.f32 %v1169_v10, %v917_v11 }
 0x33b   : > { %v877_v34 = vpop.xlane.xlu2 %876 }
 0x33c   : > { %926 = vst.msk [vmem:[%s1401_s22] sm:$0xf] %vm925_vm14, %v923_v13  ;;  %v892_v51 = vmul.f32 %v884_v59, %v877_v34 }
 0x33e   : > { %v912_v38 = vperm.slane %v892_v51, %v1385_v36 }
 0x361   : > { %v670_v30 = vpop.xlane.xlu0 %669 }
 0x362   : > { %v678_v49 = vmul.f32 %v677_v44, %v670_v30 }
 0x364   : > { %v680_v31 = vperm.slane %v678_v49, %v1385_v36 }
 0x366   : > { %683 = vst.msk [vmem:[%s435_s25] sm:$0x1] %vm682_vm0, %v680_v31 }
 0x369   : > { %v874_v37 = vpop.xlane.xlu0 %873 }
 0x36a   : > { %v891_v14 = vmul.f32 %v884_v59, %v874_v37 }
 0x36c   : > { %v911_v12 = vperm.slane %v891_v14, %v1385_v36 }
 0x36e   : > { %v919_v39 = vsel %vm914_vm12, %v911_v12, %v918_v16 }
 0x36f   : > { %v920_v41 = vsel %vm916_vm13, %v912_v38, %v919_v39 }
 0x370   : > { %v924_v42 = vmul.f32 %v1173_v40, %v920_v41 }
 0x372   : > { %927 = vst.msk [vmem:[%s1401_s22 + $0x4] sm:$0xf] %vm925_vm14, %v924_v42 }
 0x373 PF: > { %s20_s30 = sadd.s32 1, %s1180_s30  }
 0x374   : > { %p17_p4 = scmp.ge.s32.totalorder %s20_s30, 4  }
 0x376   :  { %19 = sbr.rel (!%p17_p4) target bundleno = 1 (0x1), region = 112 }

</bundles_post_ra>
